<compile_context>
chip_gen: v7x
topology: tpu7x:2x2x1
jax: 0.10.0
libtpu: 0.0.40
codegen_flags: <defaults>
</compile_context>

<pallas_src>
import math
from functools import partial

import jax
import jax.numpy as jnp
from jax import lax
from jax.experimental import pallas as pl
from jax.experimental.pallas import tpu as pltpu

LANE = 128
SUBLANE = 8


def _round_up(x, m):
    return ((x + m - 1) // m) * m


# -----------------------------------------------------------------------------
# Fused kernel: Electra cls head + convolutional span head, one batch tile/step
# -----------------------------------------------------------------------------
def _fused_kernel(xcls_ref, xctx_ref, wcat_ref, bconv_ref, wcls_ref, bcls_ref,
                  wd_ref, bd_ref, wo_ref, bo_ref, cls_ref, span_ref,
                  *, q_off, ctx_len, taps):
    # xcls_ref : (Bt, 8, H)   act dtype  first 8 sequence rows ([CLS] = row 0)
    # xctx_ref : (Bt, Lw, H)  act dtype  context window of the sequence
    # wcat_ref : (K*C, H)     bf16       conv weight, tap-major rows (k*C + c)
    # bconv_ref: (C, 1)       f32
    # wcls_ref : (2, C)       f32        span classifier weight (torch layout)
    # bcls_ref : (2, 1)       f32
    # wd_ref   : (H, H)       bf16       Electra head dense
    # bd_ref   : (1, H)       f32
    # wo_ref   : (H, 2)       bf16       Electra head out_proj
    # bo_ref   : (1, 2)       f32
    # cls_ref  : (Bt, 2)      f32        sigmoid(cls head)
    # span_ref : (2, Bt*Lw)   f32        span logits, lane-dense flat slab
    Bt, Lw, H = xctx_ref.shape
    C = bconv_ref.shape[0]
    pad = (taps - 1) // 2
    N = Bt * Lw

    # ---------------- classification head (whole batch tile at once) --------
    x0 = xcls_ref[...][:, 0, :].astype(jnp.bfloat16)                  # (Bt, H)
    h = jnp.dot(x0, wd_ref[...], preferred_element_type=jnp.float32) + bd_ref[...]
    # TODO(synk): HF Electra uses exact (erf) GELU; tanh approximation keeps
    #             the EUP path and differs by < 1e-3.
    h = jax.nn.gelu(h).astype(jnp.bfloat16)
    logits = jnp.dot(h, wo_ref[...], preferred_element_type=jnp.float32) + bo_ref[...]
    cls_ref[...] = jax.nn.sigmoid(logits)

    # ---------------- conv span head: one batched MXU pass ------------------
    # (Bt, Lw, H) -> (Bt*Lw, H) is a leading-dim merge (layout-free for Lw%8==0).
    xflat = xctx_ref[...].astype(jnp.bfloat16).reshape(N, H)
    # Contract the last dim of BOTH operands (the Q @ K^T pattern): the large
    # activation operand is consumed in place, no materialized transpose.
    y = lax.dot_general(wcat_ref[...], xflat, (((1,), (1,)), ((), ())),
                        preferred_element_type=jnp.float32)           # (K*C, N)

    # Window-local column coordinate of every lane (built once per grid step).
    j_win = lax.broadcasted_iota(jnp.int32, (1, Lw), 1)
    j = jnp.tile(j_win, (1, Bt))                                      # (1, N)

    acc = jnp.zeros((C, N), jnp.float32)
    for k in range(taps):                                             # K in {3, 5}
        s = pad - k                                                   # static shift
        yk = y[k * C:(k + 1) * C, :]                                  # (C, N) sublane slice
        if s % N:
            yk = pltpu.roll(yk, shift=s % N, axis=1)                  # XLU lane roll
        # Conv2d zero padding: output column j (window coords) receives tap k
        # only if its source column j - s lies inside the context
        # [q_off, q_off + ctx_len).  This also kills any wrap-around across the
        # window / batch-row boundaries introduced by the flattened roll.
        valid = jnp.logical_and(j >= q_off + s, j < q_off + ctx_len + s)
        acc = acc + jnp.where(valid, yk, 0.0)
    acc = jnp.maximum(acc + bconv_ref[...], 0.0)                      # bias + ReLU

    # Tiny span classifier (2 x C), kept in f32; one pass for the whole tile.
    span = jnp.dot(wcls_ref[...], acc,
                   preferred_element_type=jnp.float32) + bcls_ref[...]  # (2, N)
    span_ref[...] = span                                              # lane-dense store


# -----------------------------------------------------------------------------
# Wrapper
# -----------------------------------------------------------------------------
def intensive_reading_forward(last_hidden_state, kparams, max_qus_length,
                              max_con_length, *, block_b=8):
    B, SEQ, H = last_hidden_state.shape
    L = max_con_length
    q_start = max_qus_length
    C = kparams["b_conv_t"].shape[0]
    KC = kparams["w_cat_t"].shape[0]
    K = KC // C
    assert q_start + L <= SEQ
    assert SEQ >= SUBLANE

    # ---- choose the DMA window over the sequence axis -----------------------
    # Fast path: a lane-aligned window covering exactly the context, so the
    # kernel only ever reads [CLS] + the context (no full-sequence DMA and no
    # wrapper-side pad).  Fallback: whole sequence (still correct, still no pad).
    Lw = _round_up(L, LANE)
    ws = None
    while Lw < SEQ:
        cand = (q_start // Lw) * Lw
        if cand + Lw >= q_start + L and cand + Lw <= SEQ:
            ws = cand
            break
        Lw = _round_up(Lw * 2, LANE)
    if ws is None:
        ws, Lw = 0, SEQ
    q_off = q_start - ws                                  # static, 0 on the fast path

    # ---- batch tile ----------------------------------------------------------
    # Bt == B (block equals the full dim) or Bt % 8 == 0 keeps every BlockSpec
    # legal; with B > block_b this also yields >= 2 grid steps so v7x can shard
    # the "parallel" batch axis across its two TensorCores.
    if B <= block_b:
        Bt = B
    else:
        Bt = max(SUBLANE, (block_b // SUBLANE) * SUBLANE)
    if Bt != B and (Bt * Lw) % LANE != 0:
        Bt = B                                            # keep the flat span store lane-aligned
    nb = pl.cdiv(B, Bt)

    kernel = partial(_fused_kernel, q_off=q_off, ctx_len=L, taps=K)
    x = last_hidden_state
    ctx_blk = ws // Lw                                    # static block index of the window

    cls_out, span_flat = pl.pallas_call(
        kernel,
        out_shape=(jax.ShapeDtypeStruct((B, 2), jnp.float32),
                   jax.ShapeDtypeStruct((2, B * Lw), jnp.float32)),
        grid_spec=pltpu.PrefetchScalarGridSpec(
            num_scalar_prefetch=0,
            grid=(nb,),
            in_specs=[
                pl.BlockSpec((Bt, SUBLANE, H), lambda b: (b, 0, 0)),       # [CLS] rows
                pl.BlockSpec((Bt, Lw, H), lambda b: (b, ctx_blk, 0)),      # context window
                pl.BlockSpec((KC, H), lambda b: (0, 0)),                   # conv weight
                pl.BlockSpec((C, 1), lambda b: (0, 0)),                    # conv bias
                pl.BlockSpec((2, C), lambda b: (0, 0)),                    # span cls weight
                pl.BlockSpec((2, 1), lambda b: (0, 0)),                    # span cls bias
                pl.BlockSpec((H, H), lambda b: (0, 0)),                    # dense weight
                pl.BlockSpec((1, H), lambda b: (0, 0)),                    # dense bias
                pl.BlockSpec((H, 2), lambda b: (0, 0)),                    # out_proj weight
                pl.BlockSpec((1, 2), lambda b: (0, 0)),                    # out_proj bias
            ],
            out_specs=[
                pl.BlockSpec((Bt, 2), lambda b: (b, 0)),
                pl.BlockSpec((2, Bt * Lw), lambda b: (0, b)),
            ],
        ),
        compiler_params=pltpu.CompilerParams(
            dimension_semantics=("parallel",),            # megacore-shard the batch axis
            vmem_limit_bytes=48 * 1024 * 1024),
    )(x, x,
      kparams["w_cat_t"], kparams["b_conv_t"],
      kparams["w_cls_t"], kparams["b_cls_t"],
      kparams["w_dense"], kparams["b_dense"],
      kparams["w_out"], kparams["b_out"])

    # Tiny post-processing on the span slab (context columns of each window).
    span = span_flat.reshape(2, B, Lw)[:, :, q_off:q_off + L]
    return cls_out, span[0], span[1]


# -----------------------------------------------------------------------------
# Parameter init (mirrors the module's __init__) + one-time kernel repack
# -----------------------------------------------------------------------------
def init_params(key, hidden_dim, out_channel, filter_size):
    assert filter_size in (3, 5), "filter_size only allows to be 3 and 5"
    ks = jax.random.split(key, 8)
    gain = 1.0 / math.sqrt(2.0)
    K, H, C = filter_size, hidden_dim, out_channel

    # Conv2d(1, C, (K, H)), xavier_uniform(gain=1/sqrt(2)); stored as (K, H, C)
    fan_in, fan_out = K * H, C * K * H
    bnd = gain * math.sqrt(6.0 / (fan_in + fan_out))
    w_conv = jax.random.uniform(ks[0], (K, H, C), jnp.float32, -bnd, bnd)
    bb = 1.0 / math.sqrt(fan_in)
    b_conv = jax.random.uniform(ks[1], (C,), jnp.float32, -bb, bb)

    # cls_layer = Linear(C, 2), xavier_uniform(gain=1/sqrt(2)); torch layout (2, C)
    bnd = gain * math.sqrt(6.0 / (C + 2))
    w_cls = jax.random.uniform(ks[2], (2, C), jnp.float32, -bnd, bnd)
    bb = 1.0 / math.sqrt(C)
    b_cls = jax.random.uniform(ks[3], (2,), jnp.float32, -bb, bb)

    # ElectraClassificationHead: dense(H,H) + out_proj(H,2) (default-ish init)
    bb = 1.0 / math.sqrt(H)
    w_dense = jax.random.uniform(ks[4], (H, H), jnp.float32, -bb, bb)
    b_dense = jax.random.uniform(ks[5], (H,), jnp.float32, -bb, bb)
    w_out = jax.random.uniform(ks[6], (H, 2), jnp.float32, -bb, bb)
    b_out = jax.random.uniform(ks[7], (2,), jnp.float32, -bb, bb)

    return dict(w_conv=w_conv, b_conv=b_conv, w_cls=w_cls, b_cls=b_cls,
                w_dense=w_dense, b_dense=b_dense, w_out=w_out, b_out=b_out)


def prepare_kernel_params(params):
    """One-time repack into MXU-friendly layouts/dtypes (bf16 matmul weights,
    tap-major conv weight, lane/sublane-broadcastable biases)."""
    K, H, C = params["w_conv"].shape
    # Row k*C + c of w_cat_t is W[k, :, c]  (tap-major, contraction along H).
    w_cat_t = jnp.transpose(params["w_conv"], (0, 2, 1)).reshape(K * C, H)
    return dict(
        w_cat_t=w_cat_t.astype(jnp.bfloat16),
        b_conv_t=params["b_conv"].reshape(C, 1).astype(jnp.float32),
        w_cls_t=params["w_cls"].astype(jnp.float32),
        b_cls_t=params["b_cls"].reshape(2, 1).astype(jnp.float32),
        w_dense=params["w_dense"].astype(jnp.bfloat16),
        b_dense=params["b_dense"].reshape(1, H).astype(jnp.float32),
        w_out=params["w_out"].astype(jnp.bfloat16),
        b_out=params["b_out"].reshape(1, 2).astype(jnp.float32),
    )


# -----------------------------------------------------------------------------
# Plain-JAX (f32) reference for correctness checking
# -----------------------------------------------------------------------------
def _ref_forward(x, p, max_qus_length, max_con_length):
    q, L = max_qus_length, max_con_length
    x0 = x[:, 0, :]
    h = jax.nn.gelu(x0 @ p["w_dense"] + p["b_dense"])
    cls_out = jax.nn.sigmoid(h @ p["w_out"] + p["b_out"])

    ph = x[:, q:q + L, :]
    K = p["w_conv"].shape[0]
    pad = (K - 1) // 2
    xpad = jnp.pad(ph, ((0, 0), (pad, pad), (0, 0)))
    conv = sum(jnp.einsum("blh,hc->blc", xpad[:, k:k + L, :], p["w_conv"][k])
               for k in range(K)) + p["b_conv"]
    a = jnp.maximum(conv, 0.0)                       # dropout = identity, relu
    span = jnp.einsum("blc,dc->bld", a, p["w_cls"]) + p["b_cls"]
    return cls_out, span[..., 0], span[..., 1]


if __name__ == "__main__":
    B = 2
    H = 128            # hidden_dim (electra-small uses 256; kept small)
    OUT_CH = 8         # out_channel
    MAX_QUS = 128      # question window (incl. [CLS])
    MAX_CON = 128      # context window
    SEQ = MAX_QUS + MAX_CON

    for FILTER in (3, 5):
        key = jax.random.PRNGKey(0)
        k_params, k_hidden = jax.random.split(key)
        params = init_params(k_params, H, OUT_CH, FILTER)
        kparams = prepare_kernel_params(params)

        # Synthetic stand-in for the Electra backbone output (see TODO above);
        # backbone assumed to emit bf16 activations (no wrapper-side cast).
        last_hidden_state = jax.random.normal(
            k_hidden, (B, SEQ, H), jnp.float32).astype(jnp.bfloat16)

        cls_out, start_logits, end_logits = jax.block_until_ready(
            intensive_reading_forward(last_hidden_state, kparams, MAX_QUS, MAX_CON))

        ref_cls, ref_start, ref_end = _ref_forward(
            last_hidden_state.astype(jnp.float32), params, MAX_QUS, MAX_CON)

        assert cls_out.shape == (B, 2)
        assert start_logits.shape == (B, MAX_CON)
        assert end_logits.shape == (B, MAX_CON)
        # bf16 MXU inputs / f32 accumulation vs. the pure-f32 reference.
        assert jnp.allclose(cls_out, ref_cls, rtol=2e-2, atol=2e-2)
        assert jnp.allclose(start_logits, ref_start, rtol=2e-2, atol=2e-2)
        assert jnp.allclose(end_logits, ref_end, rtol=2e-2, atol=2e-2)

    print("KERNEL_OK")
</pallas_src>

<mosaic_0001>
module attributes {stable_mosaic.version = 11 : i64} {
  func.func @_fused_kernel(%arg0: i32, %arg1: memref<2x8x128xbf16, #tpu.memory_space<vmem>>, %arg2: memref<2x128x128xbf16, #tpu.memory_space<vmem>>, %arg3: memref<24x128xbf16, #tpu.memory_space<vmem>>, %arg4: memref<8x1xf32, #tpu.memory_space<vmem>>, %arg5: memref<2x8xf32, #tpu.memory_space<vmem>>, %arg6: memref<2x1xf32, #tpu.memory_space<vmem>>, %arg7: memref<128x128xbf16, #tpu.memory_space<vmem>>, %arg8: memref<1x128xf32, #tpu.memory_space<vmem>>, %arg9: memref<128x2xbf16, #tpu.memory_space<vmem>>, %arg10: memref<1x2xf32, #tpu.memory_space<vmem>>, %arg11: memref<2x2xf32, #tpu.memory_space<vmem>>, %arg12: memref<2x256xf32, #tpu.memory_space<vmem>>) attributes {dimension_semantics = [#tpu.dimension_semantics<parallel>], iteration_bounds = array<i64: 1>, scalar_prefetch = 0 : i64, scratch_operands = 0 : i64, tpu.core_type = #tpu.core_type<tc>, window_params = [{transform_indices = @transform_0, window_bounds = array<i64: 2, 8, 128>}, {transform_indices = @transform_1, window_bounds = array<i64: 2, 128, 128>}, {pipeline_mode = #tpu.pipeline_mode<synchronous>, transform_indices = @transform_2, window_bounds = array<i64: 24, 128>}, {pipeline_mode = #tpu.pipeline_mode<synchronous>, transform_indices = @transform_3, window_bounds = array<i64: 8, 1>}, {pipeline_mode = #tpu.pipeline_mode<synchronous>, transform_indices = @transform_4, window_bounds = array<i64: 2, 8>}, {pipeline_mode = #tpu.pipeline_mode<synchronous>, transform_indices = @transform_5, window_bounds = array<i64: 2, 1>}, {pipeline_mode = #tpu.pipeline_mode<synchronous>, transform_indices = @transform_6, window_bounds = array<i64: 128, 128>}, {pipeline_mode = #tpu.pipeline_mode<synchronous>, transform_indices = @transform_7, window_bounds = array<i64: 1, 128>}, {pipeline_mode = #tpu.pipeline_mode<synchronous>, transform_indices = @transform_8, window_bounds = array<i64: 128, 2>}, {pipeline_mode = #tpu.pipeline_mode<synchronous>, transform_indices = @transform_9, window_bounds = array<i64: 1, 2>}, {transform_indices = @transform_10, window_bounds = array<i64: 2, 2>}, {transform_indices = @transform_11, window_bounds = array<i64: 2, 256>}]} {
    %c0 = arith.constant 0 : index
    %c0_0 = arith.constant 0 : index
    %c0_1 = arith.constant 0 : index
    %0 = vector.load %arg1[%c0, %c0_0, %c0_1] : memref<2x8x128xbf16, #tpu.memory_space<vmem>>, vector<2x8x128xbf16>
    %1 = vector.extract_strided_slice %0 {offsets = [0, 0, 0], sizes = [2, 1, 128], strides = [1, 1, 1]} : vector<2x8x128xbf16> to vector<2x1x128xbf16>
    %2 = vector.shape_cast %1 : vector<2x1x128xbf16> to vector<2x128xbf16>
    %c0_2 = arith.constant 0 : index
    %c0_3 = arith.constant 0 : index
    %3 = vector.load %arg7[%c0_2, %c0_3] : memref<128x128xbf16, #tpu.memory_space<vmem>>, vector<128x128xbf16>
    %cst = arith.constant dense<0.000000e+00> : vector<2x128xf32>
    %4 = tpu.matmul %2, %3, %cst {dimension_numbers = #tpu.dot_dimension_numbers<[1], [0], [0], [1], [0, 0, 1, 1], [], []>} : vector<2x128xbf16>, vector<128x128xbf16>, vector<2x128xf32> -> vector<2x128xf32>
    %c0_4 = arith.constant 0 : index
    %c0_5 = arith.constant 0 : index
    %5 = vector.load %arg8[%c0_4, %c0_5] : memref<1x128xf32, #tpu.memory_space<vmem>>, vector<1x128xf32>
    %6 = vector.broadcast %5 : vector<1x128xf32> to vector<2x128xf32>
    %7 = arith.addf %4, %6 : vector<2x128xf32>
    %8 = arith.mulf %7, %7 : vector<2x128xf32>
    %9 = arith.mulf %7, %8 : vector<2x128xf32>
    %cst_6 = arith.constant 4.471500e-02 : f32
    %10 = vector.broadcast %cst_6 : f32 to vector<2x128xf32>
    %11 = arith.mulf %10, %9 : vector<2x128xf32>
    %12 = arith.addf %7, %11 : vector<2x128xf32>
    %cst_7 = arith.constant 0.797884583 : f32
    %13 = vector.broadcast %cst_7 : f32 to vector<2x128xf32>
    %14 = arith.mulf %13, %12 : vector<2x128xf32>
    %15 = math.tanh %14 : vector<2x128xf32>
    %cst_8 = arith.constant 1.000000e+00 : f32
    %16 = vector.broadcast %cst_8 : f32 to vector<2x128xf32>
    %17 = arith.addf %16, %15 : vector<2x128xf32>
    %cst_9 = arith.constant 5.000000e-01 : f32
    %18 = vector.broadcast %cst_9 : f32 to vector<2x128xf32>
    %19 = arith.mulf %18, %17 : vector<2x128xf32>
    %20 = arith.mulf %7, %19 : vector<2x128xf32>
    %21 = arith.truncf %20 : vector<2x128xf32> to vector<2x128xbf16>
    %c0_10 = arith.constant 0 : index
    %c0_11 = arith.constant 0 : index
    %22 = vector.load %arg9[%c0_10, %c0_11] : memref<128x2xbf16, #tpu.memory_space<vmem>>, vector<128x2xbf16>
    %cst_12 = arith.constant dense<0.000000e+00> : vector<2x2xf32>
    %23 = tpu.matmul %21, %22, %cst_12 {dimension_numbers = #tpu.dot_dimension_numbers<[1], [0], [0], [1], [0, 0, 1, 1], [], []>} : vector<2x128xbf16>, vector<128x2xbf16>, vector<2x2xf32> -> vector<2x2xf32>
    %c0_13 = arith.constant 0 : index
    %c0_14 = arith.constant 0 : index
    %24 = vector.load %arg10[%c0_13, %c0_14] : memref<1x2xf32, #tpu.memory_space<vmem>>, vector<1x2xf32>
    %25 = vector.broadcast %24 : vector<1x2xf32> to vector<2x2xf32>
    %26 = arith.addf %23, %25 : vector<2x2xf32>
    %27 = arith.negf %26 : vector<2x2xf32>
    %28 = math.exp %27 : vector<2x2xf32>
    %cst_15 = arith.constant 1.000000e+00 : f32
    %29 = vector.broadcast %cst_15 : f32 to vector<2x2xf32>
    %30 = arith.addf %29, %28 : vector<2x2xf32>
    %31 = arith.divf %29, %30 : vector<2x2xf32>
    %c0_16 = arith.constant 0 : index
    %c0_17 = arith.constant 0 : index
    %32 = vector.load %arg11[%c0_16, %c0_17] : memref<2x2xf32, #tpu.memory_space<vmem>>, vector<2x2xf32>
    tpu.vector_store %arg11[%c0_16, %c0_17], %31 {strides = array<i32>} : memref<2x2xf32, #tpu.memory_space<vmem>>, vector<2x2xf32>,
    %c0_18 = arith.constant 0 : index
    %c0_19 = arith.constant 0 : index
    %c0_20 = arith.constant 0 : index
    %33 = vector.load %arg2[%c0_18, %c0_19, %c0_20] : memref<2x128x128xbf16, #tpu.memory_space<vmem>>, vector<2x128x128xbf16>
    %34 = vector.shape_cast %33 : vector<2x128x128xbf16> to vector<256x128xbf16>
    %c0_21 = arith.constant 0 : index
    %c0_22 = arith.constant 0 : index
    %35 = vector.load %arg3[%c0_21, %c0_22] : memref<24x128xbf16, #tpu.memory_space<vmem>>, vector<24x128xbf16>
    %cst_23 = arith.constant dense<0.000000e+00> : vector<24x256xf32>
    %36 = tpu.matmul %35, %34, %cst_23 {dimension_numbers = #tpu.dot_dimension_numbers<[1], [1], [0], [0], [0, 0, 1, 0], [], []>} : vector<24x128xbf16>, vector<256x128xbf16>, vector<24x256xf32> -> vector<24x256xf32>
    %37 = tpu.iota {dimensions = array<i32: 1>} : vector<1x128xi32>
    %38 = tpu.concatenate %37, %37 in 1 : vector<1x128xi32>, vector<1x128xi32> -> vector<1x256xi32>
    %cst_24 = arith.constant 0.000000e+00 : f32
    %39 = vector.broadcast %cst_24 : f32 to vector<8x256xf32>
    %40 = vector.extract_strided_slice %36 {offsets = [0, 0], sizes = [8, 256], strides = [1, 1]} : vector<24x256xf32> to vector<8x256xf32>
    %c1_i32 = arith.constant 1 : i32
    %41 = tpu.dynamic_rotate %40 by %c1_i32 dim 1 : vector<8x256xf32>, i32 -> vector<8x256xf32>
    %c1_i32_25 = arith.constant 1 : i32
    %42 = vector.broadcast %c1_i32_25 : i32 to vector<1x256xi32>
    %43 = arith.cmpi sge, %38, %42 : vector<1x256xi32>
    %c129_i32 = arith.constant 129 : i32
    %44 = vector.broadcast %c129_i32 : i32 to vector<1x256xi32>
    %45 = arith.cmpi slt, %38, %44 : vector<1x256xi32>
    %46 = arith.andi %43, %45 : vector<1x256xi1>
    %cst_26 = arith.constant 0.000000e+00 : f32
    %47 = vector.shape_cast %46 : vector<1x256xi1> to vector<1x256xi1>
    %48 = vector.broadcast %47 : vector<1x256xi1> to vector<8x256xi1>
    %49 = vector.broadcast %cst_26 : f32 to vector<8x256xf32>
    %50 = arith.select %48, %41, %49 : vector<8x256xi1>, vector<8x256xf32>
    %51 = arith.addf %39, %50 : vector<8x256xf32>
    %52 = vector.extract_strided_slice %36 {offsets = [8, 0], sizes = [8, 256], strides = [1, 1]} : vector<24x256xf32> to vector<8x256xf32>
    %c0_i32 = arith.constant 0 : i32
    %53 = vector.broadcast %c0_i32 : i32 to vector<1x256xi32>
    %54 = arith.cmpi sge, %38, %53 : vector<1x256xi32>
    %c128_i32 = arith.constant 128 : i32
    %55 = vector.broadcast %c128_i32 : i32 to vector<1x256xi32>
    %56 = arith.cmpi slt, %38, %55 : vector<1x256xi32>
    %57 = arith.andi %54, %56 : vector<1x256xi1>
    %cst_27 = arith.constant 0.000000e+00 : f32
    %58 = vector.shape_cast %57 : vector<1x256xi1> to vector<1x256xi1>
    %59 = vector.broadcast %58 : vector<1x256xi1> to vector<8x256xi1>
    %60 = vector.broadcast %cst_27 : f32 to vector<8x256xf32>
    %61 = arith.select %59, %52, %60 : vector<8x256xi1>, vector<8x256xf32>
    %62 = arith.addf %51, %61 : vector<8x256xf32>
    %63 = vector.extract_strided_slice %36 {offsets = [16, 0], sizes = [8, 256], strides = [1, 1]} : vector<24x256xf32> to vector<8x256xf32>
    %c255_i32 = arith.constant 255 : i32
    %64 = tpu.dynamic_rotate %63 by %c255_i32 dim 1 : vector<8x256xf32>, i32 -> vector<8x256xf32>
    %c-1_i32 = arith.constant -1 : i32
    %65 = vector.broadcast %c-1_i32 : i32 to vector<1x256xi32>
    %66 = arith.cmpi sge, %38, %65 : vector<1x256xi32>
    %c127_i32 = arith.constant 127 : i32
    %67 = vector.broadcast %c127_i32 : i32 to vector<1x256xi32>
    %68 = arith.cmpi slt, %38, %67 : vector<1x256xi32>
    %69 = arith.andi %66, %68 : vector<1x256xi1>
    %cst_28 = arith.constant 0.000000e+00 : f32
    %70 = vector.shape_cast %69 : vector<1x256xi1> to vector<1x256xi1>
    %71 = vector.broadcast %70 : vector<1x256xi1> to vector<8x256xi1>
    %72 = vector.broadcast %cst_28 : f32 to vector<8x256xf32>
    %73 = arith.select %71, %64, %72 : vector<8x256xi1>, vector<8x256xf32>
    %74 = arith.addf %62, %73 : vector<8x256xf32>
    %c0_29 = arith.constant 0 : index
    %c0_30 = arith.constant 0 : index
    %75 = vector.load %arg4[%c0_29, %c0_30] : memref<8x1xf32, #tpu.memory_space<vmem>>, vector<8x1xf32>
    %76 = vector.broadcast %75 : vector<8x1xf32> to vector<8x256xf32>
    %77 = arith.addf %74, %76 : vector<8x256xf32>
    %cst_31 = arith.constant 0.000000e+00 : f32
    %78 = vector.broadcast %cst_31 : f32 to vector<8x256xf32>
    %79 = arith.maximumf %77, %78 : vector<8x256xf32>
    %c0_32 = arith.constant 0 : index
    %c0_33 = arith.constant 0 : index
    %80 = vector.load %arg5[%c0_32, %c0_33] : memref<2x8xf32, #tpu.memory_space<vmem>>, vector<2x8xf32>
    %cst_34 = arith.constant dense<0.000000e+00> : vector<2x256xf32>
    %81 = tpu.matmul %80, %79, %cst_34 {dimension_numbers = #tpu.dot_dimension_numbers<[1], [0], [0], [1], [0, 0, 1, 1], [], []>} : vector<2x8xf32>, vector<8x256xf32>, vector<2x256xf32> -> vector<2x256xf32>
    %c0_35 = arith.constant 0 : index
    %c0_36 = arith.constant 0 : index
    %82 = vector.load %arg6[%c0_35, %c0_36] : memref<2x1xf32, #tpu.memory_space<vmem>>, vector<2x1xf32>
    %83 = vector.broadcast %82 : vector<2x1xf32> to vector<2x256xf32>
    %84 = arith.addf %81, %83 : vector<2x256xf32>
    %c0_37 = arith.constant 0 : index
    %c0_38 = arith.constant 0 : index
    %85 = vector.load %arg12[%c0_37, %c0_38] : memref<2x256xf32, #tpu.memory_space<vmem>>, vector<2x256xf32>
    tpu.vector_store %arg12[%c0_37, %c0_38], %84 {strides = array<i32>} : memref<2x256xf32, #tpu.memory_space<vmem>>, vector<2x256xf32>,
    return
  }
  func.func @transform_0(%arg0: i32) -> (i32, i32, i32) {
    %c0_i32 = arith.constant 0 : i32
    %c0_i32_0 = arith.constant 0 : i32
    %c0_i32_1 = arith.constant 0 : i32
    return %arg0, %c0_i32, %c0_i32_0 : i32, i32, i32
  }
  func.func @transform_1(%arg0: i32) -> (i32, i32, i32) {
    %c1_i32 = arith.constant 1 : i32
    %c0_i32 = arith.constant 0 : i32
    %c0_i32_0 = arith.constant 0 : i32
    return %arg0, %c1_i32, %c0_i32 : i32, i32, i32
  }
  func.func @transform_2(%arg0: i32) -> (i32, i32) {
    %c0_i32 = arith.constant 0 : i32
    %c0_i32_0 = arith.constant 0 : i32
    %c0_i32_1 = arith.constant 0 : i32
    return %c0_i32, %c0_i32_0 : i32, i32
  }
  func.func @transform_3(%arg0: i32) -> (i32, i32) {
    %c0_i32 = arith.constant 0 : i32
    %c0_i32_0 = arith.constant 0 : i32
    %c0_i32_1 = arith.constant 0 : i32
    return %c0_i32, %c0_i32_0 : i32, i32
  }
  func.func @transform_4(%arg0: i32) -> (i32, i32) {
    %c0_i32 = arith.constant 0 : i32
    %c0_i32_0 = arith.constant 0 : i32
    %c0_i32_1 = arith.constant 0 : i32
    return %c0_i32, %c0_i32_0 : i32, i32
  }
  func.func @transform_5(%arg0: i32) -> (i32, i32) {
    %c0_i32 = arith.constant 0 : i32
    %c0_i32_0 = arith.constant 0 : i32
    %c0_i32_1 = arith.constant 0 : i32
    return %c0_i32, %c0_i32_0 : i32, i32
  }
  func.func @transform_6(%arg0: i32) -> (i32, i32) {
    %c0_i32 = arith.constant 0 : i32
    %c0_i32_0 = arith.constant 0 : i32
    %c0_i32_1 = arith.constant 0 : i32
    return %c0_i32, %c0_i32_0 : i32, i32
  }
  func.func @transform_7(%arg0: i32) -> (i32, i32) {
    %c0_i32 = arith.constant 0 : i32
    %c0_i32_0 = arith.constant 0 : i32
    %c0_i32_1 = arith.constant 0 : i32
    return %c0_i32, %c0_i32_0 : i32, i32
  }
  func.func @transform_8(%arg0: i32) -> (i32, i32) {
    %c0_i32 = arith.constant 0 : i32
    %c0_i32_0 = arith.constant 0 : i32
    %c0_i32_1 = arith.constant 0 : i32
    return %c0_i32, %c0_i32_0 : i32, i32
  }
  func.func @transform_9(%arg0: i32) -> (i32, i32) {
    %c0_i32 = arith.constant 0 : i32
    %c0_i32_0 = arith.constant 0 : i32
    %c0_i32_1 = arith.constant 0 : i32
    return %c0_i32, %c0_i32_0 : i32, i32
  }
  func.func @transform_10(%arg0: i32) -> (i32, i32) {
    %c0_i32 = arith.constant 0 : i32
    %c0_i32_0 = arith.constant 0 : i32
    return %arg0, %c0_i32 : i32, i32
  }
  func.func @transform_11(%arg0: i32) -> (i32, i32) {
    %c0_i32 = arith.constant 0 : i32
    %c0_i32_0 = arith.constant 0 : i32
    return %c0_i32, %arg0 : i32, i32
  }
}

</mosaic_0001>

<bundles_post_ra>
// kernel: tpu_custom_call.1
= control target key start
LH: loop header
LB: loop body
LE: loop exit
PB: predicated region body
PF: predicated region fallthrough
CT: control target
= control target key end

     0   :  { %17 = vsyncpa [#allocation3], 0  ;;  %s1207_s0 = inlined_call_operand.hbm [shape: bf16[2,256,128], index: 0, kind: input, shape index: {}]   ;;  %s1208_s1 = inlined_call_operand.hbm [shape: bf16[2,256,128], index: 1, kind: input, shape index: {}]   ;;  %s1209_s2 = inlined_call_operand.vmem [shape: bf16[24,128], index: 2, kind: input, shape index: {}]   ;;  %s1210_s3 = inlined_call_operand.vmem [shape: f32[8,1], index: 3, kind: input, shape index: {}]   ;;  %s1211_s4 = inlined_call_operand.vmem [shape: f32[2,8], index: 4, kind: input, shape index: {}]   ;;  %s1212_s5 = inlined_call_operand.vmem [shape: f32[2,1], index: 5, kind: input, shape index: {}]   ;;  %s1213_s6 = inlined_call_operand.vmem [shape: bf16[128,128], index: 6, kind: input, shape index: {}]   ;;  %s1214_s7 = inlined_call_operand.vmem [shape: f32[1,128], index: 7, kind: input, shape index: {}]   ;;  %s1215_s8 = inlined_call_operand.vmem [shape: bf16[128,2], index: 8, kind: input, shape index: {}]   ;;  %s1216_s9 = inlined_call_operand.vmem [shape: f32[1,2], index: 9, kind: input, shape index: {}]   ;;  %s1217_s10 = inlined_call_operand.hbm [shape: f32[2,2], index: 10, kind: output, shape index: {0}]   ;;  %s1218_s11 = inlined_call_operand.hbm [shape: f32[2,256], index: 11, kind: output, shape index: {1}]  }
   0x1   :  { %18 = vsyncpa [#allocation6], 0 }
   0x2   :  { %19 = vsyncpa [#allocation4], 0 }
   0x3   :  { %20 = vsyncpa [#allocation9], 0  ;;  %s988_s17 = smov [#allocation2]   ;;  %s914_s21 = scalar_lea.hbm %s1207_s0, 128 }
   0x4   :  { %s26_s18 = sshll.u32 %s988_s17, 4  ;;  %p915_p0 = scmp.ne.s32.totalorder %s1207_s0, %s914_s21  ;;  %s27_s18 = int_to_ptr.vmem [resolvable:$true] %s26_s18 }
   0x5   :  { %s916_s26 = scalar_lea.hbm %s1207_s0, 4096  ;;  %p918_p2 = scmp.lt.u32.totalorder %s914_s21, %s1207_s0 }
   0x6   :  { %p917_p1 = scmp.lt.u32.totalorder %s916_s26, %s914_s21 }
   0x8   :  { %p919_p3 = por %p918_p2, %p917_p1 }
   0xa   :  { %p920_p4 = pnand %p919_p3, %p915_p0 }
   0xc   :  { %923 = shalt.err (!%p920_p4)
}
   0xd   :  { %s924_s29 = scalar_lea.vmem %s27_s18, 128  ;;  %p929_p6 = scmp.lt.s32.totalorder %s27_s18, %s27_s18 }
   0xe   :  { %p925_p5 = scmp.ne.s32.totalorder %s27_s18, %s924_s29  ;;  %p930_p7 = scmp.lt.s32.totalorder %s924_s29, %s924_s29 }
  0x10   :  { %p931_p8 = por %p930_p7, %p929_p6 }
  0x12   :  { %p932_p9 = pnand %p931_p8, %p925_p5 }
  0x14   :  { %935 = shalt.err (!%p932_p9)
}
  0x15   :  { %s989_s30 = smov 2048   ;;  %s990_s12 = smov 64  }
  0x16   :  { %s991_s13 = smov 4  }
  0x17   :  { %32 = dma.hbm_to_vmem [thread:$0]  %s1207_s0, 128, %s27_s18, [#allocation3], %s989_s30, %s990_s12, %s991_s13  }
  0x18   :  { %s38_s19 = scalar_lea.hbm %s1208_s1, 1024  ;;  %s43_s20 = sld [smem:[#allocation0]]  }
  0x19   :  { %s992_s21 = smov [#allocation5]   ;;  %s993_s23 = smov 2048  }
  0x1a   :  { %s51_s22 = sshll.u32 %s992_s21, 4  ;;  %58 = sst [smem:[#allocation11]] %s993_s23  ;;  %s52_s22 = int_to_ptr.vmem [resolvable:$true] %s51_s22 }
  0x1b   :  { %s994_s24 = smov 1024   ;;  %s995_s25 = smov 16  }
  0x1c   :  { %60 = sst [smem:[#allocation11 + $0x1]] %s994_s24  ;;  %s996_s27 = smov 64  }
  0x1d   :  { %62 = sst [smem:[#allocation11 + $0x2]] %s995_s25  ;;  %s997_s0 = smov 4  }
  0x1e   :  { %s729_s26 = sshll.u32 %s43_s20, 26  ;;  %64 = sst [smem:[#allocation11 + $0x3]] %s996_s27 }
  0x1f   :  { %s730_s28 = sadd.s32 134217728, %s729_s26  ;;  %66 = sst [smem:[#allocation11 + $0x4]] %s996_s27 }
  0x20   :  { %68 = sst [smem:[#allocation11 + $0x5]] %s997_s0  ;;  %s998_s18 = smov [#allocation6]  }
  0x21   :  { %s999_s29 = smov [#allocation10]  }
  0x22   :  { %70 = dma.general %s38_s19, 2048, %s52_s22, %s998_s18, %s999_s29, [#allocation11], %s730_s28, 0  }
  0x23   :  { %980 = dma.done.wait [#allocation3], 128  }
  0x24   :  { %981 = vsyncadd [#allocation3], 4294967168 }
  0x25   :  { %982 = dma.done.wait [#allocation6], 2048  }
  0x26   :  { %983 = vsyncadd [#allocation6], 4294965248  ;;  %v1000_v0 = vmov 0.0   ;;  %vm1001_vm0 = vmmov 0   ;;  %v1002_v1 = vmov 0   ;;  %v872_v2 = vld [vmem:[#allocation5 + $0x40] sm:$0xff]  }
  0x27   :  { %810 = vmatprep.subr.bf16.mxu1 %v1000_v0  ;;  %826 = vmatprep.mubr.msk.bf16.mxu1 %vm1001_vm0, %v1000_v0  ;;  %v873_v3 = vld [vmem:[#allocation5] sm:$0xff]   ;;  %v874_v4 = vld [vmem:[#allocation5 + $0x48] sm:$0xff]   ;;  %v876_v6 = vld [vmem:[#allocation5 + $0x50] sm:$0xff]   ;;  %vm128_vm1 = vcmask 1041409   ;;  %vm612_vm8 = vcmask 64512   ;;  %s1006_s29 = smov [#allocation7]  }
  0x28   :  { %870 = vset.pattern.permute.xlu0 %v1002_v1  ;;  %871 = vset.pattern.permute.xlu1 %v1002_v1  ;;  %v875_v5 = vld [vmem:[#allocation5 + $0x8] sm:$0xff]   ;;  %v877_v7 = vld [vmem:[#allocation5 + $0x10] sm:$0xff]   ;;  %v878_v8 = vld [vmem:[#allocation5 + $0x58] sm:$0xff]   ;;  %vm347_vm9 = vcmask 9216  }
  0x29   :  { %790 = vmatprep.subr.bf16.mxu0 %v872_v2  ;;  %v888_v9 = vld [vmem:[%s1209_s2] sm:$0xff]   ;;  %v891_v11 = vld [vmem:[%s1213_s6 + $0x8] sm:$0xff]   ;;  %v892_v14 = vld [vmem:[%s1213_s6 + $0x10] sm:$0xff]  }
  0x2a   :  { %791 = vmatpush3.bf16.xpose.msra.mxu0 %v873_v3  ;;  %806 = vmatprep.mubr.bf16.mxu0 %v888_v9  ;;  %v890_v10 = vld [vmem:[%s1213_s6] sm:$0xff]   ;;  %v880_v13 = vld [vmem:[#allocation5 + $0x60] sm:$0xff]   ;;  %v893_v15 = vld [vmem:[%s1213_s6 + $0x18] sm:$0xff]  }
  0x2b   :  { %792 = vmatprep.subr.bf16.mxu0 %v874_v4  ;;  %811 = vmatpush3.bf16.msra.mxu1 %v890_v10  ;;  %v879_v12 = vld [vmem:[#allocation5 + $0x18] sm:$0xff]   ;;  %v881_v17 = vld [vmem:[#allocation5 + $0x20] sm:$0xff]   ;;  %v882_v18 = vld [vmem:[#allocation5 + $0x68] sm:$0xff]  }
  0x2c   :  { %812 = vmatprep.subr.bf16.mxu1 %v1000_v0  ;;  %v595_v16 = vld [vmem:[%s1210_s3] sm:$0xff]  ;;  %v895_v21 = vld [vmem:[%s1213_s6 + $0x28] sm:$0xff]   ;;  %v883_v24 = vld [vmem:[#allocation5 + $0x28] sm:$0xff]  }
  0x2d   :  { %598 = vperm.xlu0 %870, %v595_v16   ;;  %v894_v19 = vld [vmem:[%s1213_s6 + $0x20] sm:$0xff]   ;;  %v884_v25 = vld [vmem:[#allocation5 + $0x70] sm:$0xff]   ;;  %v896_v26 = vld [vmem:[%s1213_s6 + $0x30] sm:$0xff]  }
  0x2e   :  { %v899_v20 = vld [vmem:[#allocation2 + $0x4] ss:$0 sps:$4 sm:$0xff]   ;;  %v898_v22 = vld [vmem:[#allocation2] ss:$0 sps:$4 sm:$0xff]   ;;  %v897_v29 = vld [vmem:[%s1213_s6 + $0x38] sm:$0xff]  }
  0x2f   :  { %813 = vmatpush3.bf16.msra.mxu1 %v891_v11  ;;  %v126_v23 = vunpack.c.l.b16 %v899_v20  ;;  %v125_v27 = vunpack.c.l.b16 %v898_v22  ;;  %v885_v31 = vld [vmem:[#allocation5 + $0x30] sm:$0xff]   ;;  %v886_v33 = vld [vmem:[#allocation5 + $0x78] sm:$0xff]   ;;  %v889_v35 = vld [vmem:[%s1209_s2 + $0x8] ss:$0 sps:$4 sm:$0xff]  }
  0x30   :  { %814 = vmatprep.subr.bf16.mxu1 %v1000_v0  ;;  %v887_v34 = vld [vmem:[#allocation5 + $0x38] sm:$0xff]   ;;  %v901_v37 = vld [vmem:[%s1215_s8 + $0x8] sm:$0xff]   ;;  %v902_v38 = vld [vmem:[%s1215_s8 + $0x10] sm:$0xff]  }
  0x31   :  { %v127_v28 = vrot.slane %v126_v23, 7  ;;  %v900_v36 = vld [vmem:[%s1215_s8] sm:$0xff]   ;;  %v903_v39 = vld [vmem:[%s1215_s8 + $0x18] sm:$0xff]   ;;  %v905_v41 = vld [vmem:[%s1215_s8 + $0x28] sm:$0xff]  }
  0x32   :  { %793 = vmatpush3.bf16.xpose.msra.mxu0 %v875_v5  ;;  %v904_v40 = vld [vmem:[%s1215_s8 + $0x20] sm:$0xff]   ;;  %v906_v42 = vld [vmem:[%s1215_s8 + $0x30] sm:$0xff]   ;;  %v907_v43 = vld [vmem:[%s1215_s8 + $0x38] sm:$0xff]   ;;  %s1003_s8 = smov 1  }
  0x33   :  { %794 = vmatprep.subr.bf16.mxu0 %v876_v6  ;;  %815 = vmatpush3.bf16.msra.mxu1 %v892_v14  ;;  %v129_v30 = vsel %vm128_vm1, %v127_v28, %v125_v27  ;;  %v731_v44 = vld [vmem:[%s1214_s7] ss:$0 sm:$0xff]  ;;  %s1004_s7 = smov 127  }
  0x34   :  { %816 = vmatprep.subr.bf16.mxu1 %v1000_v0  ;;  %v130_v32 = vpack.c.b16 %v129_v30, %v129_v30  ;;  %v606_v2 = vld [vmem:[%s1212_s5] sm:$0x3] }
  0x37   :  { %817 = vmatpush3.bf16.msra.mxu1 %v893_v15 }
  0x38   :  { %818 = vmatprep.subr.bf16.mxu1 %v1000_v0 }
  0x3a   :  { %795 = vmatpush3.bf16.xpose.msra.mxu0 %v877_v7  ;;  %v541_v7 = vlaneseq }
  0x3b   :  { %796 = vmatprep.subr.bf16.mxu0 %v878_v8  ;;  %819 = vmatpush3.bf16.msra.mxu1 %v894_v19 }
  0x3c   :  { %820 = vmatprep.subr.bf16.mxu1 %v1000_v0  ;;  %v542_v8 = vand.u32 127, %v541_v7 }
  0x3e   :  { %vm550_vm2 = vcmp.ge.s32.totalorder %v542_v8, 1  ;;  %vm580_vm3 = vcmp.lt.s32.totalorder %v542_v8, 127  ;;  %vm547_vm4 = vcmp.lt.s32.totalorder %v542_v8, 1 }
  0x3f   :  { %821 = vmatpush3.bf16.msra.mxu1 %v895_v21  ;;  %v553_v11 = vsel %vm550_vm2, 1, %v1002_v1  ;;  %v585_v16 = vsel %vm580_vm3, 1, %v1002_v1 }
  0x40   :  { %822 = vmatprep.subr.bf16.mxu1 %v1000_v0 }
  0x42   :  { %797 = vmatpush3.bf16.xpose.msra.mxu0 %v879_v12 }
  0x43   :  { %798 = vmatprep.subr.bf16.mxu0 %v880_v13  ;;  %823 = vmatpush3.bf16.msra.mxu1 %v896_v26 }
  0x44   :  { %824 = vmatprep.subr.bf16.mxu1 %v1000_v0 }
  0x47   :  { %825 = vmatpush3.bf16.msra.mxu1 %v897_v29 }
  0x48   :  { %830 = vmatprep.subr.bf16.mxu1 %v1000_v0 }
  0x4a   :  { %799 = vmatpush3.bf16.xpose.msra.mxu0 %v881_v17  ;;  %827 = vmatmul.mubr.bf16.vlgmr.msra.gmra.mrb[0].mxu1 %v130_v32  ;;  %v1005_v17 = vmov 1  }
  0x4b   :  { %800 = vmatprep.subr.bf16.mxu0 %v882_v18  ;;  %846 = vmatprep.mubr.msk.bf16.mxu1 %vm1001_vm0, %v1000_v0 }
  0x4c   :  { %831 = vmatpush3.bf16.msra.mxu1 %v900_v36 }
  0x4d   :  { %832 = vmatprep.subr.bf16.mxu1 %v1000_v0 }
  0x50   :  { %833 = vmatpush3.bf16.msra.mxu1 %v901_v37 }
  0x51   :  { %834 = vmatprep.subr.bf16.mxu1 %v1000_v0 }
  0x52   :  { %801 = vmatpush3.bf16.xpose.msra.mxu0 %v883_v24 }
  0x53   :  { %802 = vmatprep.subr.bf16.mxu0 %v884_v25 }
  0x54   :  { %835 = vmatpush3.bf16.msra.mxu1 %v902_v38  ;;  %v605_v38 = vld [vmem:[%s1211_s4] sm:$0x3]  ;;  %s705_s4 = sshll.u32 %s1006_s29, 4  ;;  %s706_s4 = int_to_ptr.vmem [resolvable:$true] %s705_s4 }
  0x55   :  { %836 = vmatprep.subr.bf16.mxu1 %v1000_v0  ;;  %s936_s6 = scalar_lea.vmem %s706_s4, 32  ;;  %p941_p11 = scmp.lt.s32.totalorder %s706_s4, %s706_s4 }
  0x56   :  { %p937_p10 = scmp.ne.s32.totalorder %s706_s4, %s936_s6  ;;  %p942_p12 = scmp.lt.s32.totalorder %s936_s6, %s936_s6 }
  0x58   :  { %837 = vmatpush3.bf16.msra.mxu1 %v903_v39  ;;  %v742_v39 = vld [vmem:[%s1216_s9] ss:$0 sm:$0xff]  ;;  %p943_p13 = por %p942_p12, %p941_p11 }
  0x59   :  { %838 = vmatprep.subr.bf16.mxu1 %v1000_v0 }
  0x5a   :  { %803 = vmatpush3.bf16.xpose.msra.mxu0 %v885_v31  ;;  %p944_p0 = pnand %p943_p13, %p937_p10 }
  0x5b   :  { %804 = vmatprep.subr.bf16.mxu0 %v886_v33 }
  0x5c   :  { %839 = vmatpush3.bf16.msra.mxu1 %v904_v40 }
  0x5d   :  { %840 = vmatprep.subr.bf16.mxu1 %v1000_v0 }
  0x60   :  { %841 = vmatpush3.bf16.msra.mxu1 %v905_v41 }
  0x61   :  { %842 = vmatprep.subr.bf16.mxu1 %v1000_v0 }
  0x62   :  { %805 = vmatpush3.bf16.xpose.msra.mxu0 %v887_v34 }
  0x64   :  { %843 = vmatpush3.bf16.msra.mxu1 %v906_v42 }
  0x65   :  { %844 = vmatprep.subr.bf16.mxu1 %v1000_v0 }
  0x68   :  { %845 = vmatpush3.bf16.msra.mxu1 %v907_v43 }
  0x69   :  { %807 = vmatmul.mubr.bf16.vlgmr.msra.gmra.mrb[0].mxu0 %v888_v9  ;;  %v555_v9 = vshrl.u32 %v541_v7, 7 }
  0x6a   :  { %808 = vmatprep.mubr.bf16.mxu0 %v889_v35 }
  0x6b   :  { %v556_v12 = vsub.s32 0, %v555_v9 }
  0x6d   :  { %v557_v13 = vrot.slane %v553_v11, %v556_v12  ;;  %v570_v18 = vrot.slane %v1005_v17, %v556_v12  ;;  %v589_v20 = vrot.slane %v585_v16, %v556_v12 }
  0x6f   :  { %vm558_vm5 = vcmp.eq.s32.totalorder %v557_v13, 1  ;;  %vm571_vm6 = vcmp.eq.s32.totalorder %v570_v18, 1  ;;  %vm590_vm7 = vcmp.eq.s32.totalorder %v589_v20, 1 }
  0x71   :  { %809 = vmatmul.mubr.bf16.gmra.mrb[4].mxu0 %v889_v35 }
  0xac   :  { %v599_v10 = vpop.permute.xlu0 %598 }
 0x11d   :  { %v214_v45 = vpop.f32.mrb[0].mxu1 }
 0x11e   :  { %v215_v46 = vadd.f32 %v731_v44, %v214_v45  ;;  %v828_v47 = vpop.f32.mrb[1].mxu1 }
 0x11f   :  { %v217_v48 = vpop.f32.mrb[2].mxu1 }
 0x120   :  { %v220_v49 = vmul.f32 %v215_v46, %v215_v46  ;;  %v829_v50 = vpop.f32.mrb[3].mxu1 }
 0x122   :  { %v221_v51 = vmul.f32 %v220_v49, %v215_v46 }
 0x124   :  { %v222_v52 = vmul.f32 0.044715, %v221_v51 }
 0x126   :  { %v223_v53 = vadd.f32 %v222_v52, %v215_v46 }
 0x128   :  { %v224_v54 = vmul.f32 0.7978846, %v223_v53 }
 0x12a   :  { %908 = vtanh.f32 %v224_v54 }
 0x134   :  { %v909_v59 = vpop.eup %908 }
 0x135   :  { %v226_v62 = vadd.f32 1.0, %v909_v59 }
 0x137   :  { %v227_v4 = vmul.f32 0.5, %v226_v62 }
 0x139   :  { %v228_v5 = vmul.f32 %v227_v4, %v215_v46 }
 0x13b   :  { %v229_v6 = vpack.c.bf16 %v228_v5, %v228_v5 }
 0x13c   :  { %v524_v55 = vpop.f32.mrb[0].mxu0 }
 0x13d   :  { %543 = vrot.lane.b32.xlu0 %v524_v55, %s1003_s8  ;;  %v526_v56 = vpop.f32.mrb[1].mxu0  ;;  %847 = vmatmul.mubr.bf16.vlgmr.msra.gmra.mrb[4].mxu1 %v229_v6 }
 0x13e   :  { %545 = vrot.lane.b32.xlu1 %v526_v56, %s1003_s8  ;;  %v528_v57 = vpop.f32.mrb[2].mxu0  ;;  %680 = vmatprep.mubr.f32.mxu1 %v1000_v0 }
 0x13f   :  { %v530_v58 = vpop.f32.mrb[3].mxu0  ;;  %v572_v24 = vsel %vm571_vm6, %v528_v57, 0.0 }
 0x140   :  { %v573_v25 = vsel %vm571_vm6, %v530_v58, 0.0 }
 0x144   :  { %v534_v60 = vpop.f32.mrb[4].mxu0 }
 0x145   :  { %576 = vrot.lane.b32.xlu1 %v534_v60, %s1004_s7  ;;  %v536_v61 = vpop.f32.mrb[5].mxu0 }
 0x146   :  { %578 = vrot.lane.b32.xlu0 %v536_v61, %s1004_s7  ;;  %v538_v63 = vpop.f32.mrb[6].mxu0 }
 0x147   :  { %v539_v3 = vpop.f32.mrb[7].mxu0 }
 0x149   :  { %609 = vperm.xlu1 %871, %v606_v2  }
 0x1af   :  { %v544_v14 = vpop.permute.xlu0 %543 }
 0x1b0   :  { %v546_v15 = vpop.permute.xlu1 %545 }
 0x1b1   :  { %v548_v0 = vsel %vm547_vm4, %v544_v14, %v546_v15  ;;  %v549_v19 = vsel %vm547_vm4, %v546_v15, %v544_v14 }
 0x1b2   :  { %v559_v21 = vsel %vm558_vm5, %v549_v19, 0.0  ;;  %v560_v22 = vsel %vm558_vm5, %v548_v0, 0.0 }
 0x1b3   :  { %v574_v27 = vadd.f32 %v572_v24, %v559_v21  ;;  %v575_v28 = vadd.f32 %v573_v25, %v560_v22 }
 0x1b7   :  { %v577_v23 = vpop.permute.xlu1 %576 }
 0x1b8   :  { %v579_v26 = vpop.permute.xlu0 %578 }
 0x1b9   :  { %v581_v29 = vsel %vm580_vm3, %v577_v23, %v579_v26  ;;  %v582_v1 = vsel %vm580_vm3, %v579_v26, %v577_v23 }
 0x1ba   :  { %v591_v30 = vsel %vm590_vm7, %v581_v29, 0.0  ;;  %v592_v31 = vsel %vm590_vm7, %v582_v1, 0.0 }
 0x1bb   :  { %v593_v32 = vadd.f32 %v591_v30, %v574_v27  ;;  %v594_v33 = vadd.f32 %v592_v31, %v575_v28 }
 0x1bd   :  { %v601_v34 = vadd.f32 %v599_v10, %v593_v32  ;;  %v602_v35 = vadd.f32 %v599_v10, %v594_v33 }
 0x1bf   :  { %v603_v36 = vmax.f32 %v601_v34, 0.0  ;;  %v604_v37 = vmax.f32 %v602_v35, 0.0 }
 0x1c1   :  { %616 = vmatprep.subr.mxu1 %v604_v37 }
 0x1c2   :  { %617 = vmatpush1.msra.mxu1 %v603_v36 }
 0x1c3   :  { %770 = vmatmul.mubr.msk.f32.vlgmr.msra.gmra.mrb[8].mxu1 %vm612_vm8, %v605_v38 }
 0x210   :  { %v335_v40 = vpop.f32.mrb[4].mxu1 }
 0x211   :  { %v336_v41 = vadd.f32 %v742_v39, %v335_v40  ;;  %v848_v42 = vpop.f32.mrb[5].mxu1 }
 0x212   :  { %v338_v43 = vpop.f32.mrb[6].mxu1 }
 0x213   :  { %v751_v44 = vmul.f32 -1.442695, %v336_v41  ;;  %v849_v45 = vpop.f32.mrb[7].mxu1 }
 0x215   :  { %910 = vpow2.f32 %v751_v44 }
 0x21f   :  { %v911_v46 = vpop.eup %910 }
 0x220   :  { %v344_v47 = vadd.f32 1.0, %v911_v46 }
 0x222   :  { %912 = vrcp.f32 %v344_v47 }
 0x22c   :  { %v913_v48 = vpop.eup %912 }
 0x22d   :  { %348 = vst.msk [vmem:[#allocation7] sm:$0x3] %vm347_vm9, %v913_v48 }
 0x22e   :  { %947 = shalt.err (!%p944_p0)
}
 0x22f   :  { %s948_s30 = scalar_lea.hbm %s1217_s10, 32 }
 0x230   :  { %p949_p1 = scmp.ne.s32.totalorder %s1217_s10, %s948_s30  ;;  %p952_p2 = scmp.lt.u32.totalorder %s948_s30, %s1217_s10 }
 0x232   :  { %p954_p3 = pnand %p952_p2, %p949_p1 }
 0x234   :  { %957 = shalt.err (!%p954_p3)
}
 0x235   :  { %708 = dma.vmem_to_hbm [thread:$0]  %s706_s4, 32, %s1217_s10, [#allocation4]   ;;  %v610_v49 = vpop.permute.xlu1 %609 }
 0x236   :  { %s1007_s17 = smov [#allocation8]  }
 0x237   :  { %s715_s19 = sshll.u32 %s1007_s17, 4  ;;  %s716_s19 = int_to_ptr.vmem [resolvable:$true] %s715_s19 }
 0x238   :  { %s958_s20 = scalar_lea.vmem %s716_s19, 64  ;;  %p963_p5 = scmp.lt.s32.totalorder %s716_s19, %s716_s19 }
 0x239   :  { %p959_p4 = scmp.ne.s32.totalorder %s716_s19, %s958_s20  ;;  %p964_p6 = scmp.lt.s32.totalorder %s958_s20, %s958_s20 }
 0x23b   :  { %p965_p7 = por %p964_p6, %p963_p5 }
 0x23d   :  { %p966_p8 = pnand %p965_p7, %p959_p4 }
 0x296   :  { %v682_v50 = vpop.f32.mrb[8].mxu1 }
 0x297   :  { %v683_v51 = vadd.f32 %v682_v50, %v610_v49  ;;  %v684_v52 = vpop.f32.mrb[9].mxu1 }
 0x298   :  { %v685_v53 = vadd.f32 %v684_v52, %v610_v49 }
 0x29a   :  { %v689_v54 = vcombine.low %v683_v51, %v685_v53 }
 0x29c   :  { %771 = vst.sshfl [vmem:[#allocation8] sm:$0x33 pattern:$0x76325410] %v689_v54 }
 0x29d   :  { %969 = shalt.err (!%p966_p8)
}
 0x29e   :  { %s970_s10 = scalar_lea.hbm %s1218_s11, 64 }
 0x29f   :  { %p971_p9 = scmp.ne.s32.totalorder %s1218_s11, %s970_s10  ;;  %p974_p10 = scmp.lt.u32.totalorder %s970_s10, %s1218_s11 }
 0x2a1   :  { %p976_p11 = pnand %p974_p10, %p971_p9 }
 0x2a3   :  { %979 = shalt.err (!%p976_p11)
}
 0x2a4   :  { %718 = dma.vmem_to_hbm [thread:$0]  %s716_s19, 64, %s1218_s11, [#allocation9]  }
 0x2a5   :  { %984 = dma.done.wait [#allocation4], 32  }
 0x2a6   :  { %985 = vsyncadd [#allocation4], 4294967264 }
 0x2a7   :  { %986 = dma.done.wait [#allocation9], 64  }
 0x2a8   :  { %987 = vsyncadd [#allocation9], 4294967232 }
 0x2a9   :  { %725 = vsyncpa [#allocation3], 1 }
 0x2aa   :  { %726 = vsyncpa [#allocation6], 1 }
 0x2ab   :  { %727 = vsyncpa [#allocation4], 1 }
 0x2ac   :  { %728 = vsyncpa [#allocation9], 1 }

</bundles_post_ra>
